<compile_context>
chip_gen: v6e
topology: v6e:2x2x1
jax: 0.10.0
libtpu: 0.0.40
codegen_flags: <defaults>
</compile_context>

<pallas_src>
import jax
import jax.numpy as jnp
from jax.experimental import pallas as pl
from jax.experimental.pallas import tpu as pltpu

LANE = 128  # TPU lane width; feature dims are padded to multiples of this.


def _round_up(n: int, m: int) -> int:
    return ((n + m - 1) // m) * m


# -----------------------------------------------------------------------------
# Kernel
# -----------------------------------------------------------------------------
def autoencoder_kernel(x_ref,
                       w1_ref, b1_ref,
                       w2_ref, b2_ref,
                       w3_ref, b3_ref,
                       w4_ref, b4_ref,
                       o_ref):
    x = x_ref[...].astype(jnp.float32)

    # encoder: Linear -> ReLU -> Linear -> ReLU
    h1 = jnp.dot(x, w1_ref[...], preferred_element_type=jnp.float32) + b1_ref[...]
    h1 = jnp.maximum(h1, 0.0)
    code = jnp.dot(h1, w2_ref[...], preferred_element_type=jnp.float32) + b2_ref[...]
    code = jnp.maximum(code, 0.0)

    # decoder: Linear -> ReLU -> Linear -> Sigmoid
    h2 = jnp.dot(code, w3_ref[...], preferred_element_type=jnp.float32) + b3_ref[...]
    h2 = jnp.maximum(h2, 0.0)
    logits = jnp.dot(h2, w4_ref[...], preferred_element_type=jnp.float32) + b4_ref[...]

    o_ref[...] = jax.nn.sigmoid(logits).astype(o_ref.dtype)


# -----------------------------------------------------------------------------
# Parameter setup
# -----------------------------------------------------------------------------
def init_params(key, input_size, hidden_size, code_size):
    """Deterministic init. Weights stored transposed: (in_features, out_features)."""
    ks = jax.random.split(key, 8)

    def lin(kw, kb, fan_in, fan_out):
        # mimic PyTorch's uniform(-1/sqrt(fan_in), 1/sqrt(fan_in)) init
        bound = 1.0 / jnp.sqrt(jnp.float32(fan_in))
        w = jax.random.uniform(kw, (fan_in, fan_out), jnp.float32, -bound, bound)
        b = jax.random.uniform(kb, (1, fan_out), jnp.float32, -bound, bound)
        return w, b

    w1, b1 = lin(ks[0], ks[1], input_size, hidden_size)
    w2, b2 = lin(ks[2], ks[3], hidden_size, code_size)
    w3, b3 = lin(ks[4], ks[5], code_size, hidden_size)
    w4, b4 = lin(ks[6], ks[7], hidden_size, input_size)
    return {"w1": w1, "b1": b1, "w2": w2, "b2": b2,
            "w3": w3, "b3": b3, "w4": w4, "b4": b4}


def pad_params(params, lane=LANE):
    """Zero-pad every feature dimension up to a multiple of `lane` (one-time cost)."""
    def pad2(a, rows, cols):
        out = jnp.zeros((rows, cols), a.dtype)
        return out.at[:a.shape[0], :a.shape[1]].set(a)

    in_p   = _round_up(params["w1"].shape[0], lane)
    hid_p  = _round_up(params["w1"].shape[1], lane)
    code_p = _round_up(params["w2"].shape[1], lane)

    return {
        "w1": pad2(params["w1"], in_p,   hid_p),  "b1": pad2(params["b1"], 1, hid_p),
        "w2": pad2(params["w2"], hid_p,  code_p), "b2": pad2(params["b2"], 1, code_p),
        "w3": pad2(params["w3"], code_p, hid_p),  "b3": pad2(params["b3"], 1, hid_p),
        "w4": pad2(params["w4"], hid_p,  in_p),   "b4": pad2(params["b4"], 1, in_p),
    }


# -----------------------------------------------------------------------------
# Forward wrapper
# -----------------------------------------------------------------------------
def autoencoder_forward(x, pparams, tile_b=512):
    """x: (B, input_size) float32. pparams: lane-padded, pre-transposed params."""
    B, in_size = x.shape
    in_p = pparams["w1"].shape[0]          # padded input/output feature dim

    # Batch tile: as large as reasonable, but never bigger than the (8-aligned) batch.
    tile_b = min(tile_b, _round_up(B, 8))
    b_pad = _round_up(B, tile_b)
    grid = (b_pad // tile_b,)

    # Zero-pad batch rows and feature columns once on the host side.
    x_p = jnp.zeros((b_pad, in_p), x.dtype).at[:B, :in_size].set(x)

    w1, b1 = pparams["w1"], pparams["b1"]
    w2, b2 = pparams["w2"], pparams["b2"]
    w3, b3 = pparams["w3"], pparams["b3"]
    w4, b4 = pparams["w4"], pparams["b4"]

    # Weights/biases: full-array blocks with a constant index_map -> VMEM-resident.
    const = lambda a: pl.BlockSpec(a.shape, lambda i: (0, 0))

    out = pl.pallas_call(
        autoencoder_kernel,
        out_shape=jax.ShapeDtypeStruct((b_pad, in_p), x.dtype),
        grid=grid,
        in_specs=[pl.BlockSpec((tile_b, in_p), lambda i: (i, 0)),
                  const(w1), const(b1),
                  const(w2), const(b2),
                  const(w3), const(b3),
                  const(w4), const(b4)],
        out_specs=pl.BlockSpec((tile_b, in_p), lambda i: (i, 0)),
        compiler_params=pltpu.CompilerParams(
            dimension_semantics=("parallel",)),   # megacore-shard the batch axis
    )(x_p, w1, b1, w2, b2, w3, b3, w4, b4)

    # Drop padded batch rows and padded feature columns.
    return out[:B, :in_size]


# -----------------------------------------------------------------------------
# Pure-JAX reference (unpadded params)
# -----------------------------------------------------------------------------
def reference_forward(x, p):
    relu = lambda z: jnp.maximum(z, 0.0)
    h = relu(x @ p["w1"] + p["b1"])
    c = relu(h @ p["w2"] + p["b2"])
    h2 = relu(c @ p["w3"] + p["b3"])
    return jax.nn.sigmoid(h2 @ p["w4"] + p["b4"])


if __name__ == "__main__":
    key = jax.random.PRNGKey(0)
    k_x, k_x2, k_p = jax.random.split(key, 3)

    input_size, hidden_size, code_size = 64, 32, 16
    params = init_params(k_p, input_size, hidden_size, code_size)
    pparams = pad_params(params)

    # Small case (matches the module's toy shapes): single grid step.
    batch = 8
    x = jax.random.uniform(k_x, (batch, input_size), jnp.float32)
    out = jax.block_until_ready(autoencoder_forward(x, pparams))
    ref = reference_forward(x, params)
    assert out.shape == (batch, input_size)
    assert jnp.allclose(out, ref, atol=1e-5, rtol=1e-5)

    # Larger, non-multiple batch: exercises the batch grid, pipelining and the
    # padded-row / padded-column slicing path.
    batch2 = 1000
    x2 = jax.random.uniform(k_x2, (batch2, input_size), jnp.float32)
    out2 = jax.block_until_ready(autoencoder_forward(x2, pparams))
    ref2 = reference_forward(x2, params)
    assert out2.shape == (batch2, input_size)
    assert jnp.allclose(out2, ref2, atol=1e-5, rtol=1e-5)

    print("KERNEL_OK")
</pallas_src>

<mosaic_0001>
module attributes {stable_mosaic.version = 11 : i64} {
  func.func @autoencoder_kernel(%arg0: i32, %arg1: memref<8x128xf32, #tpu.memory_space<vmem>>, %arg2: memref<128x128xf32, #tpu.memory_space<vmem>>, %arg3: memref<1x128xf32, #tpu.memory_space<vmem>>, %arg4: memref<128x128xf32, #tpu.memory_space<vmem>>, %arg5: memref<1x128xf32, #tpu.memory_space<vmem>>, %arg6: memref<128x128xf32, #tpu.memory_space<vmem>>, %arg7: memref<1x128xf32, #tpu.memory_space<vmem>>, %arg8: memref<128x128xf32, #tpu.memory_space<vmem>>, %arg9: memref<1x128xf32, #tpu.memory_space<vmem>>, %arg10: memref<8x128xf32, #tpu.memory_space<vmem>>) attributes {dimension_semantics = [#tpu.dimension_semantics<parallel>], iteration_bounds = array<i64: 1>, scalar_prefetch = 0 : i64, scratch_operands = 0 : i64, tpu.core_type = #tpu.core_type<tc>, window_params = [{transform_indices = @transform_0, window_bounds = array<i64: 8, 128>}, {pipeline_mode = #tpu.pipeline_mode<synchronous>, transform_indices = @transform_1, window_bounds = array<i64: 128, 128>}, {pipeline_mode = #tpu.pipeline_mode<synchronous>, transform_indices = @transform_2, window_bounds = array<i64: 1, 128>}, {pipeline_mode = #tpu.pipeline_mode<synchronous>, transform_indices = @transform_3, window_bounds = array<i64: 128, 128>}, {pipeline_mode = #tpu.pipeline_mode<synchronous>, transform_indices = @transform_4, window_bounds = array<i64: 1, 128>}, {pipeline_mode = #tpu.pipeline_mode<synchronous>, transform_indices = @transform_5, window_bounds = array<i64: 128, 128>}, {pipeline_mode = #tpu.pipeline_mode<synchronous>, transform_indices = @transform_6, window_bounds = array<i64: 1, 128>}, {pipeline_mode = #tpu.pipeline_mode<synchronous>, transform_indices = @transform_7, window_bounds = array<i64: 128, 128>}, {pipeline_mode = #tpu.pipeline_mode<synchronous>, transform_indices = @transform_8, window_bounds = array<i64: 1, 128>}, {transform_indices = @transform_9, window_bounds = array<i64: 8, 128>}]} {
    %c0 = arith.constant 0 : index
    %c0_0 = arith.constant 0 : index
    %0 = vector.load %arg1[%c0, %c0_0] : memref<8x128xf32, #tpu.memory_space<vmem>>, vector<8x128xf32>
    %c0_1 = arith.constant 0 : index
    %c0_2 = arith.constant 0 : index
    %1 = vector.load %arg2[%c0_1, %c0_2] : memref<128x128xf32, #tpu.memory_space<vmem>>, vector<128x128xf32>
    %cst = arith.constant dense<0.000000e+00> : vector<8x128xf32>
    %2 = tpu.matmul %0, %1, %cst {dimension_numbers = #tpu.dot_dimension_numbers<[1], [0], [0], [1], [0, 0, 1, 1], [], []>} : vector<8x128xf32>, vector<128x128xf32>, vector<8x128xf32> -> vector<8x128xf32>
    %c0_3 = arith.constant 0 : index
    %c0_4 = arith.constant 0 : index
    %3 = vector.load %arg3[%c0_3, %c0_4] : memref<1x128xf32, #tpu.memory_space<vmem>>, vector<1x128xf32>
    %4 = vector.broadcast %3 : vector<1x128xf32> to vector<8x128xf32>
    %5 = arith.addf %2, %4 : vector<8x128xf32>
    %cst_5 = arith.constant 0.000000e+00 : f32
    %6 = vector.broadcast %cst_5 : f32 to vector<8x128xf32>
    %7 = arith.maximumf %5, %6 : vector<8x128xf32>
    %c0_6 = arith.constant 0 : index
    %c0_7 = arith.constant 0 : index
    %8 = vector.load %arg4[%c0_6, %c0_7] : memref<128x128xf32, #tpu.memory_space<vmem>>, vector<128x128xf32>
    %cst_8 = arith.constant dense<0.000000e+00> : vector<8x128xf32>
    %9 = tpu.matmul %7, %8, %cst_8 {dimension_numbers = #tpu.dot_dimension_numbers<[1], [0], [0], [1], [0, 0, 1, 1], [], []>} : vector<8x128xf32>, vector<128x128xf32>, vector<8x128xf32> -> vector<8x128xf32>
    %c0_9 = arith.constant 0 : index
    %c0_10 = arith.constant 0 : index
    %10 = vector.load %arg5[%c0_9, %c0_10] : memref<1x128xf32, #tpu.memory_space<vmem>>, vector<1x128xf32>
    %11 = vector.broadcast %10 : vector<1x128xf32> to vector<8x128xf32>
    %12 = arith.addf %9, %11 : vector<8x128xf32>
    %cst_11 = arith.constant 0.000000e+00 : f32
    %13 = vector.broadcast %cst_11 : f32 to vector<8x128xf32>
    %14 = arith.maximumf %12, %13 : vector<8x128xf32>
    %c0_12 = arith.constant 0 : index
    %c0_13 = arith.constant 0 : index
    %15 = vector.load %arg6[%c0_12, %c0_13] : memref<128x128xf32, #tpu.memory_space<vmem>>, vector<128x128xf32>
    %cst_14 = arith.constant dense<0.000000e+00> : vector<8x128xf32>
    %16 = tpu.matmul %14, %15, %cst_14 {dimension_numbers = #tpu.dot_dimension_numbers<[1], [0], [0], [1], [0, 0, 1, 1], [], []>} : vector<8x128xf32>, vector<128x128xf32>, vector<8x128xf32> -> vector<8x128xf32>
    %c0_15 = arith.constant 0 : index
    %c0_16 = arith.constant 0 : index
    %17 = vector.load %arg7[%c0_15, %c0_16] : memref<1x128xf32, #tpu.memory_space<vmem>>, vector<1x128xf32>
    %18 = vector.broadcast %17 : vector<1x128xf32> to vector<8x128xf32>
    %19 = arith.addf %16, %18 : vector<8x128xf32>
    %cst_17 = arith.constant 0.000000e+00 : f32
    %20 = vector.broadcast %cst_17 : f32 to vector<8x128xf32>
    %21 = arith.maximumf %19, %20 : vector<8x128xf32>
    %c0_18 = arith.constant 0 : index
    %c0_19 = arith.constant 0 : index
    %22 = vector.load %arg8[%c0_18, %c0_19] : memref<128x128xf32, #tpu.memory_space<vmem>>, vector<128x128xf32>
    %cst_20 = arith.constant dense<0.000000e+00> : vector<8x128xf32>
    %23 = tpu.matmul %21, %22, %cst_20 {dimension_numbers = #tpu.dot_dimension_numbers<[1], [0], [0], [1], [0, 0, 1, 1], [], []>} : vector<8x128xf32>, vector<128x128xf32>, vector<8x128xf32> -> vector<8x128xf32>
    %c0_21 = arith.constant 0 : index
    %c0_22 = arith.constant 0 : index
    %24 = vector.load %arg9[%c0_21, %c0_22] : memref<1x128xf32, #tpu.memory_space<vmem>>, vector<1x128xf32>
    %25 = vector.broadcast %24 : vector<1x128xf32> to vector<8x128xf32>
    %26 = arith.addf %23, %25 : vector<8x128xf32>
    %27 = arith.negf %26 : vector<8x128xf32>
    %28 = math.exp %27 : vector<8x128xf32>
    %cst_23 = arith.constant 1.000000e+00 : f32
    %29 = vector.broadcast %cst_23 : f32 to vector<8x128xf32>
    %30 = arith.addf %29, %28 : vector<8x128xf32>
    %31 = arith.divf %29, %30 : vector<8x128xf32>
    %c0_24 = arith.constant 0 : index
    %c0_25 = arith.constant 0 : index
    %32 = vector.load %arg10[%c0_24, %c0_25] : memref<8x128xf32, #tpu.memory_space<vmem>>, vector<8x128xf32>
    tpu.vector_store %arg10[%c0_24, %c0_25], %31 {strides = array<i32>} : memref<8x128xf32, #tpu.memory_space<vmem>>, vector<8x128xf32>,
    return
  }
  func.func @transform_0(%arg0: i32) -> (i32, i32) {
    %c0_i32 = arith.constant 0 : i32
    %c0_i32_0 = arith.constant 0 : i32
    return %arg0, %c0_i32 : i32, i32
  }
  func.func @transform_1(%arg0: i32) -> (i32, i32) {
    %c0_i32 = arith.constant 0 : i32
    %c0_i32_0 = arith.constant 0 : i32
    %c0_i32_1 = arith.constant 0 : i32
    return %c0_i32, %c0_i32_0 : i32, i32
  }
  func.func @transform_2(%arg0: i32) -> (i32, i32) {
    %c0_i32 = arith.constant 0 : i32
    %c0_i32_0 = arith.constant 0 : i32
    %c0_i32_1 = arith.constant 0 : i32
    return %c0_i32, %c0_i32_0 : i32, i32
  }
  func.func @transform_3(%arg0: i32) -> (i32, i32) {
    %c0_i32 = arith.constant 0 : i32
    %c0_i32_0 = arith.constant 0 : i32
    %c0_i32_1 = arith.constant 0 : i32
    return %c0_i32, %c0_i32_0 : i32, i32
  }
  func.func @transform_4(%arg0: i32) -> (i32, i32) {
    %c0_i32 = arith.constant 0 : i32
    %c0_i32_0 = arith.constant 0 : i32
    %c0_i32_1 = arith.constant 0 : i32
    return %c0_i32, %c0_i32_0 : i32, i32
  }
  func.func @transform_5(%arg0: i32) -> (i32, i32) {
    %c0_i32 = arith.constant 0 : i32
    %c0_i32_0 = arith.constant 0 : i32
    %c0_i32_1 = arith.constant 0 : i32
    return %c0_i32, %c0_i32_0 : i32, i32
  }
  func.func @transform_6(%arg0: i32) -> (i32, i32) {
    %c0_i32 = arith.constant 0 : i32
    %c0_i32_0 = arith.constant 0 : i32
    %c0_i32_1 = arith.constant 0 : i32
    return %c0_i32, %c0_i32_0 : i32, i32
  }
  func.func @transform_7(%arg0: i32) -> (i32, i32) {
    %c0_i32 = arith.constant 0 : i32
    %c0_i32_0 = arith.constant 0 : i32
    %c0_i32_1 = arith.constant 0 : i32
    return %c0_i32, %c0_i32_0 : i32, i32
  }
  func.func @transform_8(%arg0: i32) -> (i32, i32) {
    %c0_i32 = arith.constant 0 : i32
    %c0_i32_0 = arith.constant 0 : i32
    %c0_i32_1 = arith.constant 0 : i32
    return %c0_i32, %c0_i32_0 : i32, i32
  }
  func.func @transform_9(%arg0: i32) -> (i32, i32) {
    %c0_i32 = arith.constant 0 : i32
    %c0_i32_0 = arith.constant 0 : i32
    return %arg0, %c0_i32 : i32, i32
  }
}

</mosaic_0001>

<bundles_post_ra>
// kernel: tpu_custom_call.1
= control target key start
LH: loop header
LB: loop body
LE: loop exit
PB: predicated region body
PF: predicated region fallthrough
CT: control target
= control target key end

     0   :  { %14 = vsyncpa [#allocation3], 0  ;;  %s1028_s0 = inlined_call_operand.hbm [shape: f32[8,128], index: 0, kind: input, shape index: {}]   ;;  %s1029_s1 = inlined_call_operand.hbm [shape: f32[128,128], index: 1, kind: input, shape index: {}]   ;;  %s1030_s2 = inlined_call_operand.vmem [shape: f32[1,128], index: 2, kind: input, shape index: {}]   ;;  %s1031_s3 = inlined_call_operand.hbm [shape: f32[128,128], index: 3, kind: input, shape index: {}]   ;;  %s1032_s4 = inlined_call_operand.vmem [shape: f32[1,128], index: 4, kind: input, shape index: {}]   ;;  %s1033_s5 = inlined_call_operand.hbm [shape: f32[128,128], index: 5, kind: input, shape index: {}]   ;;  %s1034_s6 = inlined_call_operand.vmem [shape: f32[1,128], index: 6, kind: input, shape index: {}]   ;;  %s1035_s7 = inlined_call_operand.hbm [shape: f32[128,128], index: 7, kind: input, shape index: {}]   ;;  %s1036_s8 = inlined_call_operand.vmem [shape: f32[1,128], index: 8, kind: input, shape index: {}]   ;;  %s1037_s9 = inlined_call_operand.hbm [shape: f32[8,128], index: 9, kind: output, shape index: {}]  }
   0x1   :  { %15 = vsyncpa [#allocation6], 0 }
   0x2   :  { %16 = vsyncpa [#allocation9], 0 }
   0x3   :  { %17 = vsyncpa [#allocation4], 0  ;;  %s854_s30 = smov [#allocation5]  }
   0x4   :  { %s33_s10 = sshll.u32 %s854_s30, 4  ;;  %s34_s10 = int_to_ptr.vmem [resolvable:$true] %s33_s10 }
   0x5   :  { %s734_s11 = scalar_lea.vmem %s34_s10, 2048  ;;  %p739_p1 = scmp.lt.s32.totalorder %s34_s10, %s34_s10 }
   0x6   :  { %p735_p0 = scmp.ne.s32.totalorder %s34_s10, %s734_s11  ;;  %p740_p2 = scmp.lt.s32.totalorder %s734_s11, %s734_s11 }
   0x8   :  { %p741_p3 = por %p740_p2, %p739_p1 }
   0xa   :  { %p742_p4 = pnand %p741_p3, %p735_p0 }
   0xc   :  { %745 = shalt.err (!%p742_p4)
}
   0xd   :  { %s855_s12 = smov 128   ;;  %s856_s13 = smov 8  }
   0xe   :  { %39 = dma.hbm_to_vmem [thread:$0]  %s1029_s1, 2048, %s34_s10, [#allocation6], %s855_s12, %s855_s12, %s856_s13  }
   0xf   :  { %s857_s16 = smov [#allocation8]   ;;  %s858_s18 = smov [#allocation2]  }
  0x10   :  { %s61_s17 = sshll.u32 %s857_s16, 4  ;;  %s24_s19 = sshll.u32 %s858_s18, 4  ;;  %s62_s17 = int_to_ptr.vmem [resolvable:$true] %s61_s17  ;;  %s25_s19 = int_to_ptr.vmem [resolvable:$true] %s24_s19 }
  0x11   :  { %s754_s20 = scalar_lea.vmem %s62_s17, 2048  ;;  %p759_p6 = scmp.lt.s32.totalorder %s62_s17, %s62_s17 }
  0x12   :  { %p755_p5 = scmp.ne.s32.totalorder %s62_s17, %s754_s20  ;;  %p760_p7 = scmp.lt.s32.totalorder %s754_s20, %s754_s20 }
  0x14   :  { %p761_p8 = por %p760_p7, %p759_p6 }
  0x16   :  { %p762_p9 = pnand %p761_p8, %p755_p5 }
  0x18   :  { %765 = shalt.err (!%p762_p9)
}
  0x19   :  { %67 = dma.hbm_to_vmem [thread:$0]  %s1033_s5, 2048, %s62_s17, [#allocation9], %s855_s12, %s855_s12, %s856_s13  }
  0x1a   :  { %s774_s1 = scalar_lea.vmem %s25_s19, 128  ;;  %p779_p11 = scmp.lt.s32.totalorder %s25_s19, %s25_s19 }
  0x1b   :  { %p775_p10 = scmp.ne.s32.totalorder %s25_s19, %s774_s1  ;;  %p780_p12 = scmp.lt.s32.totalorder %s774_s1, %s774_s1 }
  0x1d   :  { %p781_p13 = por %p780_p12, %p779_p11 }
  0x1f   :  { %p782_p0 = pnand %p781_p13, %p775_p10 }
  0x21   :  { %785 = shalt.err (!%p782_p0)
}
  0x22   :  { %27 = dma.hbm_to_vmem [thread:$0]  %s1028_s0, 128, %s25_s19, [#allocation3]  }
  0x23   :  { %s859_s25 = smov [#allocation7]   ;;  %s860_s27 = smov [#allocation10]  }
  0x24   :  { %s47_s26 = sshll.u32 %s859_s25, 4  ;;  %s75_s28 = sshll.u32 %s860_s27, 4  ;;  %s48_s26 = int_to_ptr.vmem [resolvable:$true] %s47_s26  ;;  %s76_s28 = int_to_ptr.vmem [resolvable:$true] %s75_s28 }
  0x25   :  { %s794_s29 = scalar_lea.vmem %s48_s26, 2048  ;;  %p799_p2 = scmp.lt.s32.totalorder %s48_s26, %s48_s26 }
  0x26   :  { %p795_p1 = scmp.ne.s32.totalorder %s48_s26, %s794_s29  ;;  %p800_p3 = scmp.lt.s32.totalorder %s794_s29, %s794_s29 }
  0x28   :  { %p801_p4 = por %p800_p3, %p799_p2 }
  0x2a   :  { %p802_p5 = pnand %p801_p4, %p795_p1 }
  0x2c   :  { %805 = shalt.err (!%p802_p5)
}
  0x2d   :  { %53 = dma.hbm_to_vmem [thread:$0]  %s1031_s3, 2048, %s48_s26, [#allocation6], %s855_s12, %s855_s12, %s856_s13  }
  0x2e   :  { %s814_s0 = scalar_lea.vmem %s76_s28, 2048  ;;  %p819_p7 = scmp.lt.s32.totalorder %s76_s28, %s76_s28 }
  0x2f   :  { %p815_p6 = scmp.ne.s32.totalorder %s76_s28, %s814_s0  ;;  %p820_p8 = scmp.lt.s32.totalorder %s814_s0, %s814_s0 }
  0x31   :  { %p821_p9 = por %p820_p8, %p819_p7 }
  0x33   :  { %p822_p10 = pnand %p821_p9, %p815_p6 }
  0x35   :  { %825 = shalt.err (!%p822_p10)
}
  0x36   :  { %81 = dma.hbm_to_vmem [thread:$0]  %s1035_s7, 2048, %s76_s28, [#allocation9], %s855_s12, %s855_s12, %s856_s13  }
  0x37   :  { %846 = dma.done.wait [#allocation3], 128  }
  0x38   :  { %847 = vsyncadd [#allocation3], 4294967168 }
  0x39   :  { %848 = dma.done.wait [#allocation6], 4096  }
  0x3a   :  { %849 = vsyncadd [#allocation6], 4294963200 }
  0x3b   :  { %850 = dma.done.wait [#allocation9], 4096  }
  0x3c   :  { %851 = vsyncadd [#allocation9], 4294963200  ;;  %v861_v0 = vmov 0.0   ;;  %vm862_vm0 = vmmov 0   ;;  %v115_v1 = vld [vmem:[#allocation5 + $0x78] sm:$0xff]  ;;  %v114_v2 = vld [vmem:[#allocation5 + $0x70] sm:$0xff] }
  0x3d   :  { %572 = vmatprep.subr.mxu0 %v861_v0  ;;  %604 = vmatprep.mubr.msk.f32.mxu0 %vm862_vm0, %v861_v0  ;;  %v113_v3 = vld [vmem:[#allocation5 + $0x68] sm:$0xff]  ;;  %v112_v4 = vld [vmem:[#allocation5 + $0x60] sm:$0xff]  ;;  %v209_v5 = vld [vmem:[#allocation7 + $0x78] sm:$0xff]  ;;  %s863_s16 = smov [#allocation11]  }
  0x3e   :  { %607 = vmatprep.subr.mxu1 %v861_v0  ;;  %639 = vmatprep.mubr.msk.f32.mxu1 %vm862_vm0, %v861_v0  ;;  %v111_v6 = vld [vmem:[#allocation5 + $0x58] sm:$0xff]  ;;  %v208_v7 = vld [vmem:[#allocation7 + $0x70] sm:$0xff]  ;;  %v207_v8 = vld [vmem:[#allocation7 + $0x68] sm:$0xff]  ;;  %s488_s17 = sshll.u32 %s863_s16, 4  ;;  %s489_s17 = int_to_ptr.vmem [resolvable:$true] %s488_s17 }
  0x3f   :  { %573 = vmatpush3.msra.mxu0 %v115_v1  ;;  %608 = vmatpush3.msra.mxu1 %v209_v5  ;;  %v110_v9 = vld [vmem:[#allocation5 + $0x50] sm:$0xff]  ;;  %v206_v10 = vld [vmem:[#allocation7 + $0x60] sm:$0xff]  ;;  %v109_v11 = vld [vmem:[#allocation5 + $0x48] sm:$0xff]  ;;  %p831_p12 = scmp.lt.s32.totalorder %s489_s17, %s489_s17 }
  0x40   :  { %574 = vmatprep.subr.mxu0 %v861_v0  ;;  %609 = vmatprep.subr.mxu1 %v861_v0  ;;  %v205_v12 = vld [vmem:[#allocation7 + $0x58] sm:$0xff]  ;;  %v108_v13 = vld [vmem:[#allocation5 + $0x40] sm:$0xff]  ;;  %v204_v14 = vld [vmem:[#allocation7 + $0x50] sm:$0xff] }
  0x41   :  { %575 = vmatpush3.msra.mxu0 %v114_v2  ;;  %610 = vmatpush3.msra.mxu1 %v208_v7  ;;  %v107_v15 = vld [vmem:[#allocation5 + $0x38] sm:$0xff]  ;;  %v203_v16 = vld [vmem:[#allocation7 + $0x48] sm:$0xff]  ;;  %v106_v17 = vld [vmem:[#allocation5 + $0x30] sm:$0xff] }
  0x42   :  { %576 = vmatprep.subr.mxu0 %v861_v0  ;;  %611 = vmatprep.subr.mxu1 %v861_v0  ;;  %v202_v18 = vld [vmem:[#allocation7 + $0x40] sm:$0xff]  ;;  %v105_v19 = vld [vmem:[#allocation5 + $0x28] sm:$0xff]  ;;  %v201_v20 = vld [vmem:[#allocation7 + $0x38] sm:$0xff] }
  0x43   :  { %577 = vmatpush3.msra.mxu0 %v113_v3  ;;  %612 = vmatpush3.msra.mxu1 %v207_v8  ;;  %v104_v21 = vld [vmem:[#allocation5 + $0x20] sm:$0xff]  ;;  %v200_v22 = vld [vmem:[#allocation7 + $0x30] sm:$0xff]  ;;  %v103_v23 = vld [vmem:[#allocation5 + $0x18] sm:$0xff] }
  0x44   :  { %578 = vmatprep.subr.mxu0 %v861_v0  ;;  %613 = vmatprep.subr.mxu1 %v861_v0  ;;  %v199_v24 = vld [vmem:[#allocation7 + $0x28] sm:$0xff]  ;;  %v102_v25 = vld [vmem:[#allocation5 + $0x10] sm:$0xff]  ;;  %v198_v26 = vld [vmem:[#allocation7 + $0x20] sm:$0xff] }
  0x45   :  { %579 = vmatpush3.msra.mxu0 %v112_v4  ;;  %614 = vmatpush3.msra.mxu1 %v206_v10  ;;  %v101_v27 = vld [vmem:[#allocation5 + $0x8] sm:$0xff]  ;;  %v197_v28 = vld [vmem:[#allocation7 + $0x18] sm:$0xff]  ;;  %v100_v29 = vld [vmem:[#allocation5] sm:$0xff] }
  0x46   :  { %580 = vmatprep.subr.mxu0 %v861_v0  ;;  %615 = vmatprep.subr.mxu1 %v861_v0  ;;  %v99_v30 = vld [vmem:[#allocation2] sm:$0xff]  ;;  %v196_v31 = vld [vmem:[#allocation7 + $0x10] sm:$0xff]  ;;  %v195_v32 = vld [vmem:[#allocation7 + $0x8] sm:$0xff] }
  0x47   :  { %581 = vmatpush3.msra.mxu0 %v111_v6  ;;  %616 = vmatpush3.msra.mxu1 %v205_v12  ;;  %v194_v33 = vld [vmem:[#allocation7] sm:$0xff]  ;;  %v303_v34 = vld [vmem:[#allocation8 + $0x78] sm:$0xff]  ;;  %v302_v35 = vld [vmem:[#allocation8 + $0x70] sm:$0xff] }
  0x48   :  { %582 = vmatprep.subr.mxu0 %v861_v0  ;;  %617 = vmatprep.subr.mxu1 %v861_v0  ;;  %v301_v36 = vld [vmem:[#allocation8 + $0x68] sm:$0xff]  ;;  %v300_v37 = vld [vmem:[#allocation8 + $0x60] sm:$0xff]  ;;  %v299_v38 = vld [vmem:[#allocation8 + $0x58] sm:$0xff] }
  0x49   :  { %583 = vmatpush3.msra.mxu0 %v110_v9  ;;  %618 = vmatpush3.msra.mxu1 %v204_v14  ;;  %v298_v39 = vld [vmem:[#allocation8 + $0x50] sm:$0xff]  ;;  %v297_v40 = vld [vmem:[#allocation8 + $0x48] sm:$0xff]  ;;  %v296_v41 = vld [vmem:[#allocation8 + $0x40] sm:$0xff] }
  0x4a   :  { %584 = vmatprep.subr.mxu0 %v861_v0  ;;  %619 = vmatprep.subr.mxu1 %v861_v0  ;;  %v295_v42 = vld [vmem:[#allocation8 + $0x38] sm:$0xff]  ;;  %v294_v43 = vld [vmem:[#allocation8 + $0x30] sm:$0xff]  ;;  %v293_v44 = vld [vmem:[#allocation8 + $0x28] sm:$0xff] }
  0x4b   :  { %585 = vmatpush3.msra.mxu0 %v109_v11  ;;  %620 = vmatpush3.msra.mxu1 %v203_v16  ;;  %v292_v45 = vld [vmem:[#allocation8 + $0x20] sm:$0xff]  ;;  %v291_v46 = vld [vmem:[#allocation8 + $0x18] sm:$0xff]  ;;  %v290_v52 = vld [vmem:[#allocation8 + $0x10] sm:$0xff] }
  0x4c   :  { %586 = vmatprep.subr.mxu0 %v861_v0  ;;  %621 = vmatprep.subr.mxu1 %v861_v0  ;;  %v499_v47 = vld [vmem:[%s1030_s2] ss:$0 sm:$0xff]  ;;  %v289_v53 = vld [vmem:[#allocation8 + $0x8] sm:$0xff]  ;;  %v288_v54 = vld [vmem:[#allocation8] sm:$0xff] }
  0x4d   :  { %587 = vmatpush3.msra.mxu0 %v108_v13  ;;  %622 = vmatpush3.msra.mxu1 %v202_v18  ;;  %v397_v55 = vld [vmem:[#allocation10 + $0x78] sm:$0xff]  ;;  %v396_v56 = vld [vmem:[#allocation10 + $0x70] sm:$0xff]  ;;  %v395_v57 = vld [vmem:[#allocation10 + $0x68] sm:$0xff] }
  0x4e   :  { %588 = vmatprep.subr.mxu0 %v861_v0  ;;  %623 = vmatprep.subr.mxu1 %v861_v0  ;;  %v394_v58 = vld [vmem:[#allocation10 + $0x60] sm:$0xff]  ;;  %v393_v59 = vld [vmem:[#allocation10 + $0x58] sm:$0xff]  ;;  %v392_v60 = vld [vmem:[#allocation10 + $0x50] sm:$0xff] }
  0x4f   :  { %589 = vmatpush3.msra.mxu0 %v107_v15  ;;  %624 = vmatpush3.msra.mxu1 %v201_v20  ;;  %v391_v61 = vld [vmem:[#allocation10 + $0x48] sm:$0xff]  ;;  %v390_v62 = vld [vmem:[#allocation10 + $0x40] sm:$0xff]  ;;  %v389_v63 = vld [vmem:[#allocation10 + $0x38] sm:$0xff] }
  0x50   :  { %590 = vmatprep.subr.mxu0 %v861_v0  ;;  %625 = vmatprep.subr.mxu1 %v861_v0  ;;  %v388_v1 = vld [vmem:[#allocation10 + $0x30] sm:$0xff]  ;;  %v387_v2 = vld [vmem:[#allocation10 + $0x28] sm:$0xff]  ;;  %v386_v3 = vld [vmem:[#allocation10 + $0x20] sm:$0xff] }
  0x51   :  { %591 = vmatpush3.msra.mxu0 %v106_v17  ;;  %626 = vmatpush3.msra.mxu1 %v200_v22  ;;  %v385_v4 = vld [vmem:[#allocation10 + $0x18] sm:$0xff]  ;;  %v384_v10 = vld [vmem:[#allocation10 + $0x10] sm:$0xff]  ;;  %v383_v11 = vld [vmem:[#allocation10 + $0x8] sm:$0xff] }
  0x52   :  { %592 = vmatprep.subr.mxu0 %v861_v0  ;;  %627 = vmatprep.subr.mxu1 %v861_v0  ;;  %v500_v5 = vld [vmem:[%s1032_s4] ss:$0 sm:$0xff]  ;;  %v382_v12 = vld [vmem:[#allocation10] sm:$0xff] }
  0x53   :  { %593 = vmatpush3.msra.mxu0 %v105_v19  ;;  %628 = vmatpush3.msra.mxu1 %v199_v24  ;;  %v501_v13 = vld [vmem:[%s1034_s6] ss:$0 sm:$0xff]  ;;  %s826_s6 = scalar_lea.vmem %s489_s17, 128 }
  0x54   :  { %594 = vmatprep.subr.mxu0 %v861_v0  ;;  %629 = vmatprep.subr.mxu1 %v861_v0  ;;  %v502_v18 = vld [vmem:[%s1036_s8] ss:$0 sm:$0xff]  ;;  %p827_p11 = scmp.ne.s32.totalorder %s489_s17, %s826_s6  ;;  %p832_p13 = scmp.lt.s32.totalorder %s826_s6, %s826_s6 }
  0x55   :  { %595 = vmatpush3.msra.mxu0 %v104_v21  ;;  %630 = vmatpush3.msra.mxu1 %v198_v26 }
  0x56   :  { %596 = vmatprep.subr.mxu0 %v861_v0  ;;  %631 = vmatprep.subr.mxu1 %v861_v0  ;;  %p833_p0 = por %p832_p13, %p831_p12 }
  0x57   :  { %597 = vmatpush3.msra.mxu0 %v103_v23  ;;  %632 = vmatpush3.msra.mxu1 %v197_v28 }
  0x58   :  { %598 = vmatprep.subr.mxu0 %v861_v0  ;;  %633 = vmatprep.subr.mxu1 %v861_v0  ;;  %p834_p1 = pnand %p833_p0, %p827_p11 }
  0x59   :  { %599 = vmatpush3.msra.mxu0 %v102_v25  ;;  %634 = vmatpush3.msra.mxu1 %v196_v31 }
  0x5a   :  { %600 = vmatprep.subr.mxu0 %v861_v0  ;;  %635 = vmatprep.subr.mxu1 %v861_v0 }
  0x5b   :  { %601 = vmatpush3.msra.mxu0 %v101_v27  ;;  %636 = vmatpush3.msra.mxu1 %v195_v32 }
  0x5c   :  { %602 = vmatprep.subr.mxu0 %v861_v0  ;;  %637 = vmatprep.subr.mxu1 %v861_v0 }
  0x5d   :  { %603 = vmatpush3.msra.mxu0 %v100_v29  ;;  %638 = vmatpush3.msra.mxu1 %v194_v33 }
  0x5e   :  { %605 = vmatmul.mubr.f32.vlgmr.msra.gmra.mxu0 %v99_v30  ;;  %642 = vmatprep.subr.mxu0 %v861_v0 }
  0x5f   :  { %674 = vmatprep.mubr.msk.f32.mxu0 %vm862_vm0, %v861_v0  ;;  %677 = vmatprep.subr.mxu1 %v861_v0 }
  0x60   :  { %643 = vmatpush3.msra.mxu0 %v303_v34 }
  0x61   :  { %644 = vmatprep.subr.mxu0 %v861_v0 }
  0x62   :  { %645 = vmatpush3.msra.mxu0 %v302_v35 }
  0x63   :  { %646 = vmatprep.subr.mxu0 %v861_v0 }
  0x64   :  { %647 = vmatpush3.msra.mxu0 %v301_v36 }
  0x65   :  { %648 = vmatprep.subr.mxu0 %v861_v0 }
  0x66   :  { %649 = vmatpush3.msra.mxu0 %v300_v37 }
  0x67   :  { %650 = vmatprep.subr.mxu0 %v861_v0 }
  0x68   :  { %651 = vmatpush3.msra.mxu0 %v299_v38 }
  0x69   :  { %652 = vmatprep.subr.mxu0 %v861_v0 }
  0x6a   :  { %653 = vmatpush3.msra.mxu0 %v298_v39 }
  0x6b   :  { %654 = vmatprep.subr.mxu0 %v861_v0 }
  0x6c   :  { %655 = vmatpush3.msra.mxu0 %v297_v40 }
  0x6d   :  { %656 = vmatprep.subr.mxu0 %v861_v0 }
  0x6e   :  { %657 = vmatpush3.msra.mxu0 %v296_v41 }
  0x6f   :  { %658 = vmatprep.subr.mxu0 %v861_v0 }
  0x70   :  { %659 = vmatpush3.msra.mxu0 %v295_v42 }
  0x71   :  { %660 = vmatprep.subr.mxu0 %v861_v0 }
  0x72   :  { %661 = vmatpush3.msra.mxu0 %v294_v43 }
  0x73   :  { %662 = vmatprep.subr.mxu0 %v861_v0 }
  0x74   :  { %663 = vmatpush3.msra.mxu0 %v293_v44 }
  0x75   :  { %664 = vmatprep.subr.mxu0 %v861_v0 }
  0x76   :  { %665 = vmatpush3.msra.mxu0 %v292_v45 }
  0x77   :  { %666 = vmatprep.subr.mxu0 %v861_v0 }
  0x78   :  { %667 = vmatpush3.msra.mxu0 %v291_v46 }
  0x79   :  { %668 = vmatprep.subr.mxu0 %v861_v0 }
  0x7a   :  { %669 = vmatpush3.msra.mxu0 %v290_v52 }
  0x7b   :  { %670 = vmatprep.subr.mxu0 %v861_v0 }
  0x7c   :  { %671 = vmatpush3.msra.mxu0 %v289_v53 }
  0x7d   :  { %672 = vmatprep.subr.mxu0 %v861_v0 }
  0x7e   :  { %673 = vmatpush3.msra.mxu0 %v288_v54 }
 0x11e   :  { %v189_v48 = vpop.f32.mrf.mxu0 }
 0x11f   :  { %v190_v49 = vadd.f32 %v499_v47, %v189_v48 }
 0x120   :  { %v606_v50 = vpop.f32.mrf.mxu0 }
 0x121   :  { %v193_v51 = vmax.f32 %v190_v49, 0.0 }
 0x123   :  { %640 = vmatmul.mubr.f32.vlgmr.msra.gmra.mxu1 %v193_v51 }
 0x124   :  { %709 = vmatprep.mubr.msk.f32.mxu1 %vm862_vm0, %v861_v0  ;;  %678 = vmatpush3.msra.mxu1 %v397_v55 }
 0x125   :  { %679 = vmatprep.subr.mxu1 %v861_v0 }
 0x126   :  { %680 = vmatpush3.msra.mxu1 %v396_v56 }
 0x127   :  { %681 = vmatprep.subr.mxu1 %v861_v0 }
 0x128   :  { %682 = vmatpush3.msra.mxu1 %v395_v57 }
 0x129   :  { %683 = vmatprep.subr.mxu1 %v861_v0 }
 0x12a   :  { %684 = vmatpush3.msra.mxu1 %v394_v58 }
 0x12b   :  { %685 = vmatprep.subr.mxu1 %v861_v0 }
 0x12c   :  { %686 = vmatpush3.msra.mxu1 %v393_v59 }
 0x12d   :  { %687 = vmatprep.subr.mxu1 %v861_v0 }
 0x12e   :  { %688 = vmatpush3.msra.mxu1 %v392_v60 }
 0x12f   :  { %689 = vmatprep.subr.mxu1 %v861_v0 }
 0x130   :  { %690 = vmatpush3.msra.mxu1 %v391_v61 }
 0x131   :  { %691 = vmatprep.subr.mxu1 %v861_v0 }
 0x132   :  { %692 = vmatpush3.msra.mxu1 %v390_v62 }
 0x133   :  { %693 = vmatprep.subr.mxu1 %v861_v0 }
 0x134   :  { %694 = vmatpush3.msra.mxu1 %v389_v63 }
 0x135   :  { %695 = vmatprep.subr.mxu1 %v861_v0 }
 0x136   :  { %696 = vmatpush3.msra.mxu1 %v388_v1 }
 0x137   :  { %697 = vmatprep.subr.mxu1 %v861_v0 }
 0x138   :  { %698 = vmatpush3.msra.mxu1 %v387_v2 }
 0x139   :  { %699 = vmatprep.subr.mxu1 %v861_v0 }
 0x13a   :  { %700 = vmatpush3.msra.mxu1 %v386_v3 }
 0x13b   :  { %701 = vmatprep.subr.mxu1 %v861_v0 }
 0x13c   :  { %702 = vmatpush3.msra.mxu1 %v385_v4 }
 0x13d   :  { %703 = vmatprep.subr.mxu1 %v861_v0 }
 0x13e   :  { %704 = vmatpush3.msra.mxu1 %v384_v10 }
 0x13f   :  { %705 = vmatprep.subr.mxu1 %v861_v0 }
 0x140   :  { %706 = vmatpush3.msra.mxu1 %v383_v11 }
 0x141   :  { %707 = vmatprep.subr.mxu1 %v861_v0 }
 0x142   :  { %708 = vmatpush3.msra.mxu1 %v382_v12 }
 0x1e3   :  { %v283_v6 = vpop.f32.mrf.mxu1 }
 0x1e4   :  { %v284_v7 = vadd.f32 %v500_v5, %v283_v6 }
 0x1e5   :  { %v641_v8 = vpop.f32.mrf.mxu1 }
 0x1e6   :  { %v287_v9 = vmax.f32 %v284_v7, 0.0 }
 0x1e8   :  { %675 = vmatmul.mubr.f32.vlgmr.msra.gmra.mxu0 %v287_v9 }
 0x2a8   :  { %v377_v14 = vpop.f32.mrf.mxu0 }
 0x2a9   :  { %v378_v15 = vadd.f32 %v501_v13, %v377_v14 }
 0x2aa   :  { %v676_v16 = vpop.f32.mrf.mxu0 }
 0x2ab   :  { %v381_v17 = vmax.f32 %v378_v15, 0.0 }
 0x2ad   :  { %710 = vmatmul.mubr.f32.vlgmr.msra.gmra.mxu1 %v381_v17 }
 0x36d   :  { %v471_v19 = vpop.f32.mrf.mxu1 }
 0x36e   :  { %v472_v20 = vadd.f32 %v502_v18, %v471_v19 }
 0x36f   :  { %v711_v21 = vpop.f32.mrf.mxu1 }
 0x370   :  { %v503_v22 = vmul.f32 -1.442695, %v472_v20 }
 0x372   :  { %722 = vpow2.f32 %v503_v22 }
 0x37f   :  { %v723_v0 = vpop.eup %722 }
 0x380   :  { %v478_v23 = vadd.f32 1.0, %v723_v0 }
 0x382   :  { %724 = vrcp.f32 %v478_v23 }
 0x38f   :  { %v725_v24 = vpop.eup %724 }
 0x390   :  { %481 = vst [vmem:[#allocation11] sm:$0xff] %v725_v24 }
 0x391   :  { %837 = shalt.err (!%p834_p1)
}
 0x392   :  { %491 = dma.vmem_to_hbm [thread:$0]  %s489_s17, 128, %s1037_s9, [#allocation4]  }
 0x393   :  { %852 = dma.done.wait [#allocation4], 128  }
 0x394   :  { %853 = vsyncadd [#allocation4], 4294967168 }
 0x395   :  { %495 = vsyncpa [#allocation3], 1 }
 0x396   :  { %496 = vsyncpa [#allocation6], 1 }
 0x397   :  { %497 = vsyncpa [#allocation9], 1 }
 0x398   :  { %498 = vsyncpa [#allocation4], 1 }

</bundles_post_ra>
